<compile_context>
chip_gen: v7x
topology: tpu7x:2x2x1
jax: 0.10.0
libtpu: 0.0.40
codegen_flags: <defaults>
</compile_context>

<pallas_src>
import functools
import math

import jax
import jax.numpy as jnp
from jax import lax
from jax.experimental import pallas as pl
from jax.experimental.pallas import tpu as pltpu


# --------------------------------------------------------------- sizing ------

@functools.cache
def _vmem_capacity_bytes():
    try:
        return int(pltpu.get_tpu_info().vmem_capacity_bytes)
    except Exception:
        return 64 * 1024 * 1024  # conservative fallback (v7x per-core VMEM)


def _choose_block_rows(n_rows, n_cols, elem_bytes, n_streams):
    """Pick a big row block: n_streams double-buffered inputs + f32 accumulator."""
    cap = _vmem_capacity_bytes()
    total_budget = cap // 4                              # 16 MiB on v7x, 32 MiB v5e/v6e
    bytes_per_row = n_cols * (2 * n_streams * elem_bytes + 4)
    block_rows = total_budget // max(bytes_per_row, 1)
    # cap every single input buffer (~2 MiB on v7x, ~4 MiB on v5e/v6e)
    per_buffer_cap = max(cap // 32, 1 << 20)
    block_rows = min(block_rows, per_buffer_cap // max(n_cols * elem_bytes, 1))
    if block_rows >= n_rows:
        return n_rows                                    # full array in one block
    block_rows = max(8, (block_rows // 8) * 8)
    return min(block_rows, n_rows)


# --------------------------------------------------------------- kernel ------

def _make_reduce_kernel(transform, n_inputs, n_rows, block_rows,
                        blocks_per_split, need_mask):
    def kernel(*refs):
        in_refs = refs[:n_inputs]
        o_ref = refs[n_inputs]
        acc_ref = refs[n_inputs + 1]
        p = pl.program_id(0)      # split (maps to a TensorCore on v7x)
        i = pl.program_id(1)      # row-block within the split

        @pl.when(i == 0)
        def _init():
            acc_ref[...] = jnp.zeros_like(acc_ref)

        vals = [r[...].astype(jnp.float32) for r in in_refs]
        val = transform(*vals)
        if need_mask:
            blk = p * blocks_per_split + i
            row = blk * block_rows + lax.broadcasted_iota(jnp.int32, val.shape, 0)
            val = jnp.where(row < n_rows, val, 0.0)
        acc_ref[...] += val                               # pure VPU work per step

        @pl.when(i == blocks_per_split - 1)
        def _finalize():
            total = jnp.sum(acc_ref[...])                 # single cross-lane reduce
            r_id = lax.broadcasted_iota(jnp.int32, o_ref.shape, 0)
            c_id = lax.broadcasted_iota(jnp.int32, o_ref.shape, 1)
            o_ref[...] = jnp.where((r_id == 0) & (c_id == 0), total, 0.0)

    return kernel


def _streaming_reduce(transform, arrays, block_rows=None):
    """sum(transform(*arrays)) over all elements; arrays must share one shape."""
    arrs = []
    for a in arrays:
        a = jnp.asarray(a)
        if a.ndim < 2:
            a = a.reshape(1, -1)
        else:
            a = a.reshape(-1, a.shape[-1])   # free reshape, no HBM copy
        arrs.append(a)
    n_rows, n_cols = arrs[0].shape
    for a in arrs:
        assert a.shape == (n_rows, n_cols), "fused reduction inputs must share a shape"
    elem_bytes = max(a.dtype.itemsize for a in arrs)

    if block_rows is None:
        block_rows = _choose_block_rows(n_rows, n_cols, elem_bytes, len(arrs))
    block_rows = min(block_rows, n_rows)

    n_blocks = -(-n_rows // block_rows)
    n_split = 2 if n_blocks >= 2 else 1          # feed both v7x TensorCores
    blocks_per_split = -(-n_blocks // n_split)
    need_mask = (n_blocks * block_rows != n_rows) or (n_split * blocks_per_split != n_blocks)

    kernel = _make_reduce_kernel(transform, len(arrs), n_rows, block_rows,
                                 blocks_per_split, need_mask)

    def in_map(p, i):
        return (jnp.minimum(p * blocks_per_split + i, n_blocks - 1), 0)

    in_specs = [pl.BlockSpec((block_rows, n_cols), in_map) for _ in arrs]
    out_spec = pl.BlockSpec((8, 128), lambda p, i: (p, 0))

    cap = _vmem_capacity_bytes()
    used = (2 * len(arrs) * block_rows * n_cols * elem_bytes   # double-buffered inputs
            + block_rows * n_cols * 4)                         # f32 accumulator
    vmem_limit = int(min(max(used + (16 << 20), 32 << 20), (3 * cap) // 4))

    partials = pl.pallas_call(
        kernel,
        out_shape=jax.ShapeDtypeStruct((8 * n_split, 128), jnp.float32),
        grid_spec=pltpu.PrefetchScalarGridSpec(
            num_scalar_prefetch=0,
            grid=(n_split, blocks_per_split),
            in_specs=in_specs,
            out_specs=out_spec,
            scratch_shapes=[pltpu.VMEM((block_rows, n_cols), jnp.float32)],
        ),
        compiler_params=pltpu.CompilerParams(
            dimension_semantics=("parallel", "arbitrary"),
            vmem_limit_bytes=vmem_limit,
        ),
    )(*arrs)
    return jnp.sum(partials)


# ------------------------------------------------------------ transforms -----

def _xsig_transform(pred, targ):
    ey = targ - pred
    # ey * (2*sigmoid(ey) - 1) == ey * tanh(ey / 2)  (single EUP transcendental)
    return ey * jnp.tanh(0.5 * ey)


def _square_transform(z):
    return z * z


def _sum_transform(*xs):
    out = xs[0]
    for x in xs[1:]:
        out = out + x
    return out


# --------------------------------------------------------------- wrappers ----

def xsigmoid_loss(prediction, target):
    """mean(ey * (2*sigmoid(ey) - 1)), ey = target - prediction."""
    total = _streaming_reduce(_xsig_transform, [prediction, target])
    n = math.prod(jnp.asarray(prediction).shape)
    return total / jnp.float32(n)


def wavebender_glow_loss(glow_output, prediction, targets):
    z, log_s_list, log_det_W_list = glow_output

    mel_loss = xsigmoid_loss(prediction, targets)

    # Fuse all same-shape log_s tensors into one pallas_call per group.
    groups = {}
    for log_s in log_s_list:
        log_s = jnp.asarray(log_s)
        groups.setdefault((log_s.shape, str(log_s.dtype)), []).append(log_s)
    log_s_total = jnp.float32(0.0)
    for group in groups.values():
        log_s_total = log_s_total + _streaming_reduce(_sum_transform, group)

    log_det_W_total = jnp.float32(0.0)
    for log_det_W in log_det_W_list:
        log_det_W_total = log_det_W_total + jnp.asarray(log_det_W, jnp.float32)

    z_sq_sum = _streaming_reduce(_square_transform, [z])
    glow_loss = z_sq_sum / 2.0 - log_s_total - log_det_W_total
    glow_loss = glow_loss / jnp.float32(z.shape[0] * z.shape[1] * z.shape[2])

    # exp(x)/(1+exp(x)) == sigmoid(x); sigmoid is the numerically stable form.
    loss = mel_loss + jax.nn.sigmoid(glow_loss / 10.0)
    return loss


# --------------------------------------------------------------- reference ---

def _reference_loss(glow_output, prediction, targets):
    z, log_s_list, log_det_W_list = glow_output
    ey = targets - prediction
    mel_loss = jnp.mean(ey * (2.0 * jax.nn.sigmoid(ey) - 1.0))
    log_s_total = sum(jnp.sum(ls) for ls in log_s_list)
    log_det_W_total = sum(jnp.asarray(w, jnp.float32) for w in log_det_W_list)
    glow_loss = jnp.sum(z * z) / 2.0 - log_s_total - log_det_W_total
    glow_loss = glow_loss / (z.shape[0] * z.shape[1] * z.shape[2])
    return mel_loss + jnp.exp(glow_loss / 10.0) / (1.0 + jnp.exp(glow_loss / 10.0))


if __name__ == "__main__":
    key = jax.random.PRNGKey(0)
    k_z, k_p, k_t, k_s0, k_s1, k_w = jax.random.split(key, 6)

    # small shapes: mel (B=2, n_mel=8, T=64); glow z (B=2, C=4, T=64)
    prediction = jax.random.normal(k_p, (2, 8, 64), jnp.float32)
    targets = jax.random.normal(k_t, (2, 8, 64), jnp.float32)
    z = jax.random.normal(k_z, (2, 4, 64), jnp.float32)
    log_s_list = [
        0.1 * jax.random.normal(k_s0, (2, 2, 64), jnp.float32),
        0.1 * jax.random.normal(k_s1, (2, 2, 64), jnp.float32),
    ]
    w_vals = 0.5 * jax.random.normal(k_w, (2,), jnp.float32)
    log_det_W_list = [w_vals[0], w_vals[1]]

    glow_output = (z, log_s_list, log_det_W_list)

    loss = wavebender_glow_loss(glow_output, prediction, targets)
    loss = jax.block_until_ready(loss)

    ref = _reference_loss(glow_output, prediction, targets)
    assert jnp.allclose(loss, ref, rtol=1e-5, atol=1e-5), (loss, ref)

    # extra self-check of the multi-block / ragged-mask / dual-split path
    big = jax.random.normal(key, (3, 7, 128), jnp.float32)   # 21 rows of 128 lanes
    chk = _streaming_reduce(_square_transform, [big], block_rows=8)
    chk = jax.block_until_ready(chk)
    assert jnp.allclose(chk, jnp.sum(big * big), rtol=1e-5, atol=1e-3), (
        chk, jnp.sum(big * big))

    print("KERNEL_OK")
</pallas_src>

<mosaic_0001>
module attributes {stable_mosaic.version = 11 : i64} {
  func.func @kernel(%arg0: i32, %arg1: i32, %arg2: memref<16x64xf32, #tpu.memory_space<vmem>>, %arg3: memref<16x64xf32, #tpu.memory_space<vmem>>, %arg4: memref<8x128xf32, #tpu.memory_space<vmem>>, %arg5: memref<16x64xf32, #tpu.memory_space<vmem>>) attributes {dimension_semantics = [#tpu.dimension_semantics<parallel>, #tpu.dimension_semantics<arbitrary>], iteration_bounds = array<i64: 1, 1>, scalar_prefetch = 0 : i64, scratch_operands = 1 : i64, tpu.core_type = #tpu.core_type<tc>, window_params = [{transform_indices = @transform_0, window_bounds = array<i64: 16, 64>}, {transform_indices = @transform_1, window_bounds = array<i64: 16, 64>}, {transform_indices = @transform_2, window_bounds = array<i64: 8, 128>}]} {
    %c0_i32 = arith.constant 0 : i32
    %0 = arith.cmpi eq, %arg1, %c0_i32 : i32
    %1 = arith.extui %0 : i1 to i32
    %c0_i32_0 = arith.constant 0 : i32
    %2 = arith.cmpi ne, %1, %c0_i32_0 : i32
    scf.if %2 {
      %cst_10 = arith.constant 0.000000e+00 : f32
      %16 = vector.broadcast %cst_10 : f32 to vector<16x64xf32>
      %c0_11 = arith.constant 0 : index
      %c0_12 = arith.constant 0 : index
      %17 = vector.load %arg5[%c0_11, %c0_12] : memref<16x64xf32, #tpu.memory_space<vmem>>, vector<16x64xf32>
      tpu.vector_store %arg5[%c0_11, %c0_12], %16 {strides = array<i32>} : memref<16x64xf32, #tpu.memory_space<vmem>>, vector<16x64xf32>,
    } else {
    }
    %c0 = arith.constant 0 : index
    %c0_1 = arith.constant 0 : index
    %3 = vector.load %arg2[%c0, %c0_1] : memref<16x64xf32, #tpu.memory_space<vmem>>, vector<16x64xf32>
    %c0_2 = arith.constant 0 : index
    %c0_3 = arith.constant 0 : index
    %4 = vector.load %arg3[%c0_2, %c0_3] : memref<16x64xf32, #tpu.memory_space<vmem>>, vector<16x64xf32>
    %5 = arith.subf %4, %3 : vector<16x64xf32>
    %cst = arith.constant 5.000000e-01 : f32
    %6 = vector.broadcast %cst : f32 to vector<16x64xf32>
    %7 = arith.mulf %6, %5 : vector<16x64xf32>
    %8 = math.tanh %7 : vector<16x64xf32>
    %9 = arith.mulf %5, %8 : vector<16x64xf32>
    %c0_4 = arith.constant 0 : index
    %c0_5 = arith.constant 0 : index
    %10 = vector.load %arg5[%c0_4, %c0_5] : memref<16x64xf32, #tpu.memory_space<vmem>>, vector<16x64xf32>
    %11 = arith.addf %10, %9 : vector<16x64xf32>
    %c0_6 = arith.constant 0 : index
    %c0_7 = arith.constant 0 : index
    %12 = vector.load %arg5[%c0_6, %c0_7] : memref<16x64xf32, #tpu.memory_space<vmem>>, vector<16x64xf32>
    tpu.vector_store %arg5[%c0_6, %c0_7], %11 {strides = array<i32>} : memref<16x64xf32, #tpu.memory_space<vmem>>, vector<16x64xf32>,
    %c0_i32_8 = arith.constant 0 : i32
    %13 = arith.cmpi eq, %arg1, %c0_i32_8 : i32
    %14 = arith.extui %13 : i1 to i32
    %c0_i32_9 = arith.constant 0 : i32
    %15 = arith.cmpi ne, %14, %c0_i32_9 : i32
    scf.if %15 {
      %c0_10 = arith.constant 0 : index
      %c0_11 = arith.constant 0 : index
      %16 = vector.load %arg5[%c0_10, %c0_11] : memref<16x64xf32, #tpu.memory_space<vmem>>, vector<16x64xf32>
      %17 = vector.shape_cast %16 : vector<16x64xf32> to vector<1x16x64xf32>
      %cst_12 = arith.constant dense<0.000000e+00> : vector<1xf32>
      %18 = vector.multi_reduction <add>, %17, %cst_12 [1, 2] : vector<1x16x64xf32> to vector<1xf32>
      %19 = vector.shape_cast %18 : vector<1xf32> to vector<1x1x1xf32>
      %20 = vector.extract %19[0, 0, 0] : f32 from vector<1x1x1xf32>
      %21 = tpu.iota {dimensions = array<i32: 0>} : vector<8x128xi32>
      %22 = tpu.iota {dimensions = array<i32: 1>} : vector<8x128xi32>
      %c0_i32_13 = arith.constant 0 : i32
      %23 = vector.broadcast %c0_i32_13 : i32 to vector<8x128xi32>
      %24 = arith.cmpi eq, %21, %23 : vector<8x128xi32>
      %c0_i32_14 = arith.constant 0 : i32
      %25 = vector.broadcast %c0_i32_14 : i32 to vector<8x128xi32>
      %26 = arith.cmpi eq, %22, %25 : vector<8x128xi32>
      %27 = arith.andi %24, %26 : vector<8x128xi1>
      %cst_15 = arith.constant 0.000000e+00 : f32
      %28 = vector.broadcast %20 : f32 to vector<8x128xf32>
      %29 = vector.broadcast %cst_15 : f32 to vector<8x128xf32>
      %30 = arith.select %27, %28, %29 : vector<8x128xi1>, vector<8x128xf32>
      %c0_16 = arith.constant 0 : index
      %c0_17 = arith.constant 0 : index
      %31 = vector.load %arg4[%c0_16, %c0_17] : memref<8x128xf32, #tpu.memory_space<vmem>>, vector<8x128xf32>
      tpu.vector_store %arg4[%c0_16, %c0_17], %30 {strides = array<i32>} : memref<8x128xf32, #tpu.memory_space<vmem>>, vector<8x128xf32>,
    } else {
    }
    return
  }
  func.func @transform_0(%arg0: i32, %arg1: i32) -> (i32, i32) {
    %c1_i32 = arith.constant 1 : i32
    %0 = arith.muli %arg0, %c1_i32 : i32
    %1 = arith.addi %0, %arg1 : i32
    %c0_i32 = arith.constant 0 : i32
    %2 = arith.minsi %1, %c0_i32 : i32
    %c0_i32_0 = arith.constant 0 : i32
    %c0_i32_1 = arith.constant 0 : i32
    return %2, %c0_i32_0 : i32, i32
  }
  func.func @transform_1(%arg0: i32, %arg1: i32) -> (i32, i32) {
    %c1_i32 = arith.constant 1 : i32
    %0 = arith.muli %arg0, %c1_i32 : i32
    %1 = arith.addi %0, %arg1 : i32
    %c0_i32 = arith.constant 0 : i32
    %2 = arith.minsi %1, %c0_i32 : i32
    %c0_i32_0 = arith.constant 0 : i32
    %c0_i32_1 = arith.constant 0 : i32
    return %2, %c0_i32_0 : i32, i32
  }
  func.func @transform_2(%arg0: i32, %arg1: i32) -> (i32, i32) {
    %c0_i32 = arith.constant 0 : i32
    %c0_i32_0 = arith.constant 0 : i32
    return %arg0, %c0_i32 : i32, i32
  }
}

</mosaic_0001>

<bundles_post_ra>
// kernel: tpu_custom_call.1
= control target key start
LH: loop header
LB: loop body
LE: loop exit
PB: predicated region body
PF: predicated region fallthrough
CT: control target
= control target key end

     0   :  { %7 = vsyncpa [#allocation4], 0  ;;  %s280_s0 = inlined_call_operand.hbm [shape: f32[16,64], index: 0, kind: input, shape index: {}]   ;;  %s281_s1 = inlined_call_operand.hbm [shape: f32[16,64], index: 1, kind: input, shape index: {}]   ;;  %s282_s2 = inlined_call_operand.hbm [shape: f32[8,128], index: 2, kind: output, shape index: {}]  }
   0x1   :  { %8 = vsyncpa [#allocation7], 0 }
   0x2   :  { %9 = vsyncpa [#allocation5], 0  ;;  %s217_s9 = smov [#allocation3]   ;;  %s145_s13 = scalar_lea.hbm %s280_s0, 256 }
   0x3   :  { %s21_s10 = sshll.u32 %s217_s9, 4  ;;  %p146_p0 = scmp.ne.s32.totalorder %s280_s0, %s145_s13  ;;  %s22_s10 = int_to_ptr.vmem [resolvable:$true] %s21_s10 }
   0x4   :  { %p149_p1 = scmp.lt.u32.totalorder %s145_s13, %s280_s0 }
   0x6   :  { %p151_p2 = pnand %p149_p1, %p146_p0 }
   0x8   :  { %154 = shalt.err (!%p151_p2)
}
   0x9   :  { %s155_s18 = scalar_lea.vmem %s22_s10, 256  ;;  %p160_p4 = scmp.lt.s32.totalorder %s22_s10, %s22_s10 }
   0xa   :  { %p156_p3 = scmp.ne.s32.totalorder %s22_s10, %s155_s18  ;;  %p161_p5 = scmp.lt.s32.totalorder %s155_s18, %s155_s18 }
   0xc   :  { %p162_p6 = por %p161_p5, %p160_p4 }
   0xe   :  { %p163_p7 = pnand %p162_p6, %p156_p3 }
  0x10   :  { %166 = shalt.err (!%p163_p7)
}
  0x11   :  { %s218_s19 = smov 128   ;;  %s219_s20 = smov 8  }
  0x12   :  { %27 = dma.hbm_to_vmem [thread:$0]  %s280_s0, 256, %s22_s10, [#allocation4], %s218_s19, %s218_s19, %s219_s20  }
  0x13   :  { %s220_s23 = smov [#allocation6]   ;;  %s167_s27 = scalar_lea.hbm %s281_s1, 256 }
  0x14   :  { %s39_s24 = sshll.u32 %s220_s23, 4  ;;  %p168_p8 = scmp.ne.s32.totalorder %s281_s1, %s167_s27  ;;  %s40_s24 = int_to_ptr.vmem [resolvable:$true] %s39_s24 }
  0x15   :  { %p171_p9 = scmp.lt.u32.totalorder %s167_s27, %s281_s1 }
  0x17   :  { %p173_p10 = pnand %p171_p9, %p168_p8 }
  0x19   :  { %176 = shalt.err (!%p173_p10)
}
  0x1a   :  { %s177_s4 = scalar_lea.vmem %s40_s24, 256  ;;  %p182_p12 = scmp.lt.s32.totalorder %s40_s24, %s40_s24 }
  0x1b   :  { %p178_p11 = scmp.ne.s32.totalorder %s40_s24, %s177_s4  ;;  %p183_p13 = scmp.lt.s32.totalorder %s177_s4, %s177_s4 }
  0x1d   :  { %p184_p0 = por %p183_p13, %p182_p12 }
  0x1f   :  { %p185_p1 = pnand %p184_p0, %p178_p11 }
  0x21   :  { %188 = shalt.err (!%p185_p1)
}
  0x22   :  { %45 = dma.hbm_to_vmem [thread:$0]  %s281_s1, 256, %s40_s24, [#allocation7], %s218_s19, %s218_s19, %s219_s20  }
  0x23   :  { %211 = dma.done.wait [#allocation4], 256  }
  0x24   :  { %212 = vsyncadd [#allocation4], 4294967040 }
  0x25   :  { %213 = dma.done.wait [#allocation7], 256  }
  0x26   :  { %214 = vsyncadd [#allocation7], 4294967040  ;;  %vm64_vm0 = vcmask 523264   ;;  %v221_v0 = vmov 0.0   ;;  %v67_v1 = vld [vmem:[#allocation3] sm:$0xff]  ;;  %v68_v2 = vld [vmem:[#allocation3 + $0x8] sm:$0xff]  ;;  %v103_v29 = vlaneseq }
  0x27   :  { %65 = vst.msk [vmem:[#allocation2] sm:$0xff] %vm64_vm0, %v221_v0  ;;  %66 = vst.msk [vmem:[#allocation2 + $0x8] sm:$0xff] %vm64_vm0, %v221_v0  ;;  %v69_v3 = vld [vmem:[#allocation6] sm:$0xff]  ;;  %v70_v4 = vld [vmem:[#allocation6 + $0x8] sm:$0xff]  ;;  %s222_s1 = smov [#allocation8]  }
  0x28   :  { %v71_v5 = vsub.f32 %v69_v3, %v67_v1  ;;  %v72_v6 = vsub.f32 %v70_v4, %v68_v2  ;;  %v104_v30 = vshrl.u32 %v103_v29, 7  ;;  %v106_v31 = vand.u32 127, %v103_v29  ;;  %s119_s6 = sshll.u32 %s222_s1, 4  ;;  %s120_s6 = int_to_ptr.vmem [resolvable:$true] %s119_s6 }
  0x29   :  { %s189_s8 = scalar_lea.vmem %s120_s6, 128  ;;  %p194_p3 = scmp.lt.s32.totalorder %s120_s6, %s120_s6 }
  0x2a   :  { %v73_v7 = vmul.f32 0.5, %v71_v5  ;;  %v74_v8 = vmul.f32 0.5, %v72_v6  ;;  %vm107_vm1 = vcmp.eq.s32.totalorder %v104_v30, 0  ;;  %vm108_vm2 = vcmp.eq.s32.totalorder %v106_v31, 0  ;;  %p190_p2 = scmp.ne.s32.totalorder %s120_s6, %s189_s8  ;;  %p195_p4 = scmp.lt.s32.totalorder %s189_s8, %s189_s8 }
  0x2b   :  { %vm109_vm3 = vmand %vm107_vm1, %vm108_vm2 }
  0x2c   :  { %141 = vtanh.f32 %v73_v7  ;;  %p196_p5 = por %p195_p4, %p194_p3 }
  0x2d   :  { %143 = vtanh.f32 %v74_v8 }
  0x2e   :  { %v79_v10 = vld [vmem:[#allocation2] sm:$0xff]  ;;  %v80_v13 = vld [vmem:[#allocation2 + $0x8] sm:$0xff]  ;;  %p197_p6 = pnand %p196_p5, %p190_p2 }
  0x36   :  { %v142_v9 = vpop.eup %141 }
  0x37   :  { %v144_v11 = vpop.eup %143  ;;  %v77_v12 = vmul.f32 %v142_v9, %v71_v5 }
  0x38   :  { %v78_v14 = vmul.f32 %v144_v11, %v72_v6 }
  0x39   :  { %v81_v15 = vadd.f32 %v79_v10, %v77_v12 }
  0x3a   :  { %v82_v16 = vadd.f32 %v80_v13, %v78_v14 }
  0x3b   :  { %84 = vst.msk [vmem:[#allocation2] sm:$0xff] %vm64_vm0, %v81_v15 }
  0x3c   :  { %85 = vst.msk [vmem:[#allocation2 + $0x8] sm:$0xff] %vm64_vm0, %v82_v16 }
  0x42   :  { %v89_v17 = vld [vmem:[#allocation2] sm:$0xff] }
  0x43   :  { %v90_v18 = vld [vmem:[#allocation2 + $0x8] sm:$0xff]  ;;  %v91_v19 = vsel %vm64_vm0, %v89_v17, 0.0 }
  0x44   :  { %v92_v20 = vsel %vm64_vm0, %v90_v18, 0.0 }
  0x45   :  { %v93_v21 = vadd.f32 %v92_v20, %v91_v19 }
  0x47   :  { %94 = vadd.xlane.f32.xlu0 %v93_v21 }
  0xd4   :  { %v95_v22 = vpop.xlane.xlu0 %94 }
  0xd5   :  { %v96_v23 = vrot.slane %v95_v22, 4 }
  0xd7   :  { %v97_v24 = vadd.f32 %v96_v23, %v95_v22 }
  0xd9   :  { %v98_v25 = vrot.slane %v97_v24, 2 }
  0xdb   :  { %v99_v26 = vadd.f32 %v98_v25, %v97_v24 }
  0xdd   :  { %v100_v27 = vrot.slane %v99_v26, 1 }
  0xdf   :  { %v101_v28 = vadd.f32 %v100_v27, %v99_v26 }
  0xe1   :  { %133 = vpush %v101_v28 }
 0x112   :  { %s134_s7 = spop %133 }
 0x113   :  { %v110_v32 = vstv %s134_s7 }
 0x114   :  { %v111_v33 = vsel %vm109_vm3, %v110_v32, 0.0 }
 0x115   :  { %112 = vst [vmem:[#allocation8] sm:$0xff] %v111_v33 }
 0x116   :  { %200 = shalt.err (!%p197_p6)
}
 0x117   :  { %s201_s11 = scalar_lea.hbm %s282_s2, 128 }
 0x118   :  { %p202_p7 = scmp.ne.s32.totalorder %s282_s2, %s201_s11  ;;  %p205_p8 = scmp.lt.u32.totalorder %s201_s11, %s282_s2 }
 0x11a   :  { %p207_p9 = pnand %p205_p8, %p202_p7 }
 0x11c   :  { %210 = shalt.err (!%p207_p9)
}
 0x11d   :  { %122 = dma.vmem_to_hbm [thread:$0]  %s120_s6, 128, %s282_s2, [#allocation5]  }
 0x11e   :  { %215 = dma.done.wait [#allocation5], 128  }
 0x11f   :  { %216 = vsyncadd [#allocation5], 4294967168 }
 0x120   :  { %126 = vsyncpa [#allocation4], 1 }
 0x121   :  { %127 = vsyncpa [#allocation7], 1 }
 0x122   :  { %128 = vsyncpa [#allocation5], 1 }

</bundles_post_ra>
